<compile_context>
chip_gen: v7x
topology: tpu7x:2x2x1
jax: 0.10.0
libtpu: 0.0.40
codegen_flags: <defaults>
</compile_context>

<pallas_src>
import functools

import jax
import jax.numpy as jnp
from jax.experimental import pallas as pl
from jax.experimental.pallas import tpu as pltpu

MARGIN = 0.35
SCALE = 30.0


def _round_up(a, b):
    return (a + b - 1) // b * b


def am_branch_kernel(x_ref, w_ref, inv_xn_ref, lab_ref, o_ref, *,
                     margin, scale, bf16_matmul):
    j = pl.program_id(1)
    tn = o_ref.shape[1]

    w = w_ref[...]

    # Column inverse norms from the already-resident W tile (f32 accumulate).
    # Cost ~1/TM of the matmul; avoids any extra wrapper pass over W.
    wf = w.astype(jnp.float32)
    inv_wn = jax.lax.rsqrt(
        jnp.maximum(jnp.sum(wf * wf, axis=0, keepdims=True), 1e-30))  # (1, TN)

    x = x_ref[...]
    if bf16_matmul:
        # Opt-in fast MXU path (numerics change ~1e-3 * scale). For the full
        # DMA win pass bf16 arrays in, so W is also streamed at half width.
        x = x.astype(jnp.bfloat16)
        w = w.astype(jnp.bfloat16)

    logits = jnp.dot(x, w, preferred_element_type=jnp.float32)        # (TM, TN)

    cos = jnp.clip(logits * inv_xn_ref[...] * inv_wn, -1.0, 1.0)

    # One-hot match rebuilt from per-row labels; the tile's column offset is
    # folded into the (TM,1) labels rather than the full (TM,TN) iota.
    col = jax.lax.broadcasted_iota(jnp.int32, cos.shape, 1)
    match = col == (lab_ref[...] - j * tn)

    o_ref[...] = (jnp.where(match, cos - margin, cos) * scale).astype(o_ref.dtype)


def pad_weight(weight, in_dim=None, out_dim=None, tn=512):
    """Pad W to (round_up(K,128), round_up(N,tn)) ONCE at parameter-init time
    so the jit'd hot path never touches W outside the kernel's own DMA."""
    k, n = weight.shape
    kp = _round_up(k if in_dim is None else in_dim, 128)
    np_ = _round_up(n if out_dim is None else out_dim, tn)
    return jnp.pad(weight, ((0, kp - k), (0, np_ - n)))


@functools.partial(
    jax.jit,
    static_argnames=("out_dim", "tm", "tn", "out_dtype", "bf16_matmul",
                     "margin", "scale", "w_buffer_count"))
def am_branch(x, weight, labels, *, out_dim=None, tm=None, tn=None,
              out_dtype=jnp.float32, bf16_matmul=False,
              margin=MARGIN, scale=SCALE, w_buffer_count=2):
    """AM-Softmax branch forward.

    x:       (B, in_dim) float32 or bfloat16
    weight:  (in_dim, out_dim) float32 or bfloat16 (may be pre-padded via pad_weight)
    labels:  (B,) int32 class indices (equivalent to the module's one-hot mask)
    returns: (B, out_dim) out_dtype
    """
    B, in_dim = x.shape
    kw, nw = weight.shape
    out_dim_eff = nw if out_dim is None else out_dim

    itemsize = lambda dt: jnp.dtype(dt).itemsize
    row_align = 16 if (bf16_matmul or x.dtype == jnp.bfloat16) else 8

    # Lane-dense class tiles (multiple of 128) keep output stores unmasked.
    TN = tn if tn is not None else min(512, _round_up(out_dim_eff, 128))
    if tm is not None:
        TM = tm
    else:
        # Scale TM with the batch (W is re-streamed Bp/TM times); target >= 2
        # batch tiles for v7x megacore, cap at 1024 rows for VMEM.
        TM = max(row_align, min(1024, _round_up((B + 1) // 2, row_align)))

    Kp = _round_up(max(in_dim, kw), 128)      # lane-dense K; zero padding exact
    Np = _round_up(out_dim_eff, TN)
    Bp = _round_up(B, TM)
    assert kw <= Kp and nw <= Np

    # Row inverse norms of x: one tiny fused XLA pass (x << W), so the kernel
    # needs no scratch / ordering and both grid axes can be "parallel".
    xf = x.astype(jnp.float32)
    inv_xn = jax.lax.rsqrt(
        jnp.maximum(jnp.sum(xf * xf, axis=1, keepdims=True), 1e-30))   # (B, 1)

    x_p = jnp.pad(x, ((0, Bp - B), (0, Kp - in_dim)))
    inv_xn_p = jnp.pad(inv_xn, ((0, Bp - B), (0, 0)))
    lab_p = jnp.pad(labels.astype(jnp.int32).reshape(-1, 1),
                    ((0, Bp - B), (0, 0)), constant_values=-1)          # never matches
    if weight.shape == (Kp, Np):
        w_p = weight                            # aligned / pre-padded: no extra W pass
    else:
        w_p = jnp.pad(weight, ((0, Kp - kw), (0, Np - nw)))

    grid = (Bp // TM, Np // TN)

    # Optional deeper pipelining on the streamed W operand only.
    w_spec_kwargs = {}
    if w_buffer_count != 2:
        w_spec_kwargs["pipeline_mode"] = pl.Buffered(w_buffer_count)
    w_spec = pl.BlockSpec((Kp, TN), lambda i, j: (0, j), **w_spec_kwargs)

    # VMEM budget: double-buffered x / out tiles + w_buffer_count W tiles.
    est = (2 * TM * Kp * itemsize(x.dtype)
           + max(2, w_buffer_count) * Kp * TN * itemsize(weight.dtype)
           + 2 * TM * TN * itemsize(out_dtype)
           + 4 * TM * 8)
    vmem_limit = int(min(100 * 1024 * 1024, max(32 * 1024 * 1024, int(est * 1.5))))

    kernel = functools.partial(am_branch_kernel, margin=float(margin),
                               scale=float(scale), bf16_matmul=bf16_matmul)

    out = pl.pallas_call(
        kernel,
        out_shape=jax.ShapeDtypeStruct((Bp, Np), out_dtype),
        grid_spec=pltpu.PrefetchScalarGridSpec(
            num_scalar_prefetch=0,
            grid=grid,
            in_specs=[
                pl.BlockSpec((TM, Kp), lambda i, j: (i, 0)),   # x tile
                w_spec,                                         # weight tile
                pl.BlockSpec((TM, 1), lambda i, j: (i, 0)),    # 1/||x|| rows
                pl.BlockSpec((TM, 1), lambda i, j: (i, 0)),    # per-row labels
            ],
            out_specs=pl.BlockSpec((TM, TN), lambda i, j: (i, j)),
        ),
        compiler_params=pltpu.CompilerParams(
            # No cross-step state -> both axes independent (v7x megacore may
            # split either one).
            dimension_semantics=("parallel", "parallel"),
            vmem_limit_bytes=vmem_limit,
        ),
    )(x_p, w_p, inv_xn_p, lab_p)

    return out[:B, :out_dim_eff]


def init_weight(key, in_dim, out_dim):
    # Mirrors: uniform_(-1, 1).renorm_(2, 1, 1e-05).mul_(100000.0)
    # -> each column ends up (approximately) unit L2 norm.
    w = jax.random.uniform(key, (in_dim, out_dim), jnp.float32, minval=-1.0, maxval=1.0)
    col_norm = jnp.sqrt(jnp.sum(w * w, axis=0, keepdims=True))
    return w / jnp.maximum(col_norm, 1e-12)


def reference(x, weight, labels, margin=MARGIN, scale=SCALE):
    x_norm = jnp.sqrt(jnp.sum(x * x, axis=1, keepdims=True))
    w_norm = jnp.sqrt(jnp.sum(weight * weight, axis=0, keepdims=True))
    cos = jnp.clip((x @ weight) / x_norm / w_norm, -1.0, 1.0)
    phi = cos - margin
    mask = jax.nn.one_hot(labels, weight.shape[1], dtype=jnp.bool_)
    return jnp.where(mask, phi, cos) * scale


if __name__ == "__main__":
    key = jax.random.PRNGKey(0)

    # Test 1: original toy shapes (single grid step), f32 end-to-end.
    k_w, k_x, k_lab = jax.random.split(key, 3)
    B, in_dim, out_dim = 8, 32, 16
    x = jax.random.normal(k_x, (B, in_dim), jnp.float32)
    weight = init_weight(k_w, in_dim, out_dim)
    labels = jax.random.randint(k_lab, (B,), 0, out_dim, dtype=jnp.int32)

    out = jax.block_until_ready(am_branch(x, weight, labels))
    ref = reference(x, weight, labels)
    assert out.shape == (B, out_dim)
    assert jnp.allclose(out, ref, atol=1e-4, rtol=1e-4), "mismatch (test 1)"

    # Test 2: real (3 x 3) grid, class-tile column offset, padding of
    # B / out_dim / in_dim, forced small tiles.
    k_w2, k_x2, k_lab2 = jax.random.split(jax.random.PRNGKey(1), 3)
    B2, in_dim2, out_dim2 = 24, 160, 384
    x2 = jax.random.normal(k_x2, (B2, in_dim2), jnp.float32)
    weight2 = init_weight(k_w2, in_dim2, out_dim2)
    labels2 = jax.random.randint(k_lab2, (B2,), 0, out_dim2, dtype=jnp.int32)

    out2 = jax.block_until_ready(am_branch(x2, weight2, labels2, tm=8, tn=128))
    ref2 = reference(x2, weight2, labels2)
    assert out2.shape == (B2, out_dim2)
    assert jnp.allclose(out2, ref2, atol=1e-4, rtol=1e-4), "mismatch (test 2)"

    # Test 3: opt-in bf16 inputs + bf16 MXU + bf16 output (relaxed tolerance),
    # pre-padded weight path (zero wrapper passes over W).
    k_w3, k_x3, k_lab3 = jax.random.split(jax.random.PRNGKey(2), 3)
    B3, in_dim3, out_dim3 = 16, 128, 256
    x3 = jax.random.normal(k_x3, (B3, in_dim3), jnp.float32).astype(jnp.bfloat16)
    weight3 = init_weight(k_w3, in_dim3, out_dim3).astype(jnp.bfloat16)
    labels3 = jax.random.randint(k_lab3, (B3,), 0, out_dim3, dtype=jnp.int32)
    w3_pre = pad_weight(weight3, tn=128)

    out3 = jax.block_until_ready(
        am_branch(x3, w3_pre, labels3, out_dim=out_dim3, tn=128,
                  bf16_matmul=True, out_dtype=jnp.bfloat16))
    ref3 = reference(x3.astype(jnp.float32), weight3.astype(jnp.float32), labels3)
    assert out3.shape == (B3, out_dim3)
    assert jnp.allclose(out3.astype(jnp.float32), ref3, atol=0.3, rtol=3e-2), \
        "mismatch (test 3)"

    print("KERNEL_OK")
</pallas_src>

<mosaic_0001>
module attributes {stable_mosaic.version = 11 : i64} {
  func.func @am_branch_kernel(%arg0: i32, %arg1: i32, %arg2: memref<8x128xf32, #tpu.memory_space<vmem>>, %arg3: memref<128x128xf32, #tpu.memory_space<vmem>>, %arg4: memref<8x1xf32, #tpu.memory_space<vmem>>, %arg5: memref<8x1xi32, #tpu.memory_space<vmem>>, %arg6: memref<8x128xf32, #tpu.memory_space<vmem>>) attributes {dimension_semantics = [#tpu.dimension_semantics<parallel>, #tpu.dimension_semantics<parallel>], iteration_bounds = array<i64: 1, 1>, scalar_prefetch = 0 : i64, scratch_operands = 0 : i64, tpu.core_type = #tpu.core_type<tc>, window_params = [{transform_indices = @transform_0, window_bounds = array<i64: 8, 128>}, {transform_indices = @transform_1, window_bounds = array<i64: 128, 128>}, {transform_indices = @transform_2, window_bounds = array<i64: 8, 1>}, {transform_indices = @transform_3, window_bounds = array<i64: 8, 1>}, {transform_indices = @transform_4, window_bounds = array<i64: 8, 128>}]} {
    %c0 = arith.constant 0 : index
    %c0_0 = arith.constant 0 : index
    %0 = vector.load %arg3[%c0, %c0_0] : memref<128x128xf32, #tpu.memory_space<vmem>>, vector<128x128xf32>
    %1 = arith.mulf %0, %0 : vector<128x128xf32>
    %cst = arith.constant dense<0.000000e+00> : vector<128xf32>
    %2 = vector.multi_reduction <add>, %1, %cst [0] : vector<128x128xf32> to vector<128xf32>
    %3 = vector.shape_cast %2 : vector<128xf32> to vector<1x128xf32>
    %cst_1 = arith.constant 1.000000e-30 : f32
    %4 = vector.broadcast %cst_1 : f32 to vector<1x128xf32>
    %5 = arith.maximumf %3, %4 : vector<1x128xf32>
    %6 = math.rsqrt %5 : vector<1x128xf32>
    %c0_2 = arith.constant 0 : index
    %c0_3 = arith.constant 0 : index
    %7 = vector.load %arg2[%c0_2, %c0_3] : memref<8x128xf32, #tpu.memory_space<vmem>>, vector<8x128xf32>
    %cst_4 = arith.constant dense<0.000000e+00> : vector<8x128xf32>
    %8 = tpu.matmul %7, %0, %cst_4 {dimension_numbers = #tpu.dot_dimension_numbers<[1], [0], [0], [1], [0, 0, 1, 1], [], []>} : vector<8x128xf32>, vector<128x128xf32>, vector<8x128xf32> -> vector<8x128xf32>
    %c0_5 = arith.constant 0 : index
    %c0_6 = arith.constant 0 : index
    %9 = vector.load %arg4[%c0_5, %c0_6] : memref<8x1xf32, #tpu.memory_space<vmem>>, vector<8x1xf32>
    %10 = vector.broadcast %9 : vector<8x1xf32> to vector<8x128xf32>
    %11 = arith.mulf %8, %10 : vector<8x128xf32>
    %12 = vector.broadcast %6 : vector<1x128xf32> to vector<8x128xf32>
    %13 = arith.mulf %11, %12 : vector<8x128xf32>
    %cst_7 = arith.constant -1.000000e+00 : f32
    %cst_8 = arith.constant 1.000000e+00 : f32
    %14 = vector.broadcast %cst_7 : f32 to vector<8x128xf32>
    %15 = arith.maximumf %14, %13 : vector<8x128xf32>
    %16 = vector.broadcast %cst_8 : f32 to vector<8x128xf32>
    %17 = arith.minimumf %16, %15 : vector<8x128xf32>
    %18 = tpu.iota {dimensions = array<i32: 1>} : vector<8x128xi32>
    %c0_9 = arith.constant 0 : index
    %c0_10 = arith.constant 0 : index
    %19 = vector.load %arg5[%c0_9, %c0_10] : memref<8x1xi32, #tpu.memory_space<vmem>>, vector<8x1xi32>
    %c128_i32 = arith.constant 128 : i32
    %20 = arith.muli %arg1, %c128_i32 : i32
    %21 = vector.broadcast %20 : i32 to vector<8x1xi32>
    %22 = arith.subi %19, %21 : vector<8x1xi32>
    %23 = vector.broadcast %22 : vector<8x1xi32> to vector<8x128xi32>
    %24 = arith.cmpi eq, %18, %23 : vector<8x128xi32>
    %cst_11 = arith.constant 3.500000e-01 : f32
    %25 = vector.broadcast %cst_11 : f32 to vector<8x128xf32>
    %26 = arith.subf %17, %25 : vector<8x128xf32>
    %27 = arith.select %24, %26, %17 : vector<8x128xi1>, vector<8x128xf32>
    %cst_12 = arith.constant 3.000000e+01 : f32
    %28 = vector.broadcast %cst_12 : f32 to vector<8x128xf32>
    %29 = arith.mulf %27, %28 : vector<8x128xf32>
    %c0_13 = arith.constant 0 : index
    %c0_14 = arith.constant 0 : index
    %30 = vector.load %arg6[%c0_13, %c0_14] : memref<8x128xf32, #tpu.memory_space<vmem>>, vector<8x128xf32>
    tpu.vector_store %arg6[%c0_13, %c0_14], %29 {strides = array<i32>} : memref<8x128xf32, #tpu.memory_space<vmem>>, vector<8x128xf32>,
    return
  }
  func.func @transform_0(%arg0: i32, %arg1: i32) -> (i32, i32) {
    %c0_i32 = arith.constant 0 : i32
    %c0_i32_0 = arith.constant 0 : i32
    return %arg0, %c0_i32 : i32, i32
  }
  func.func @transform_1(%arg0: i32, %arg1: i32) -> (i32, i32) {
    %c0_i32 = arith.constant 0 : i32
    %c0_i32_0 = arith.constant 0 : i32
    return %c0_i32, %arg1 : i32, i32
  }
  func.func @transform_2(%arg0: i32, %arg1: i32) -> (i32, i32) {
    %c0_i32 = arith.constant 0 : i32
    %c0_i32_0 = arith.constant 0 : i32
    return %arg0, %c0_i32 : i32, i32
  }
  func.func @transform_3(%arg0: i32, %arg1: i32) -> (i32, i32) {
    %c0_i32 = arith.constant 0 : i32
    %c0_i32_0 = arith.constant 0 : i32
    return %arg0, %c0_i32 : i32, i32
  }
  func.func @transform_4(%arg0: i32, %arg1: i32) -> (i32, i32) {
    %c0_i32 = arith.constant 0 : i32
    return %arg0, %arg1 : i32, i32
  }
}

</mosaic_0001>

<bundles_post_ra>
// kernel: am_branch.1
= control target key start
LH: loop header
LB: loop body
LE: loop exit
PB: predicated region body
PF: predicated region fallthrough
CT: control target
= control target key end

     0   :  { %v292_v3 = vmov 0.0|0.0   ;;  %vm293_vm0 = vmmov 0   ;;  %v294_v9 = vmov 0.0   ;;  %s399_s0 = inlined_call_operand.vmem [shape: f32[8,128], index: 0, kind: input, shape index: {}]   ;;  %s400_s1 = inlined_call_operand.vmem [shape: f32[128,128], index: 1, kind: input, shape index: {}]   ;;  %s401_s2 = inlined_call_operand.vmem [shape: f32[8,1], index: 2, kind: input, shape index: {}]   ;;  %s402_s3 = inlined_call_operand.vmem [shape: s32[8,1], index: 3, kind: input, shape index: {}]   ;;  %s403_s4 = inlined_call_operand.hbm [shape: f32[8,128], index: 4, kind: output, shape index: {}]  }
   0x1   :  { %v18_v0 = vld [vmem:[%s400_s1] sm:$0xff]  ;;  %v19_v1 = vld [vmem:[%s400_s1 + $0x8] sm:$0xff]  ;;  %v20_v2 = vld [vmem:[%s400_s1 + $0x10] sm:$0xff]  ;;  %236 = vmatprep.subr.bf16.mxu0 %v292_v3  ;;  %233 = vmatprep.mubr.msk.f32.mxu0 %vm293_vm0, %v294_v9 }
   0x2   :  { %v34_v4 = vmul.f32 %v18_v0, %v18_v0  ;;  %v35_v5 = vmul.f32 %v19_v1, %v19_v1  ;;  %v237_v6 = vpack.c.bf16 %v19_v1, %v18_v0  ;;  %v21_v7 = vld [vmem:[%s400_s1 + $0x18] sm:$0xff]  ;;  %v36_v8 = vmul.f32 %v20_v2, %v20_v2  ;;  %v22_v13 = vld [vmem:[%s400_s1 + $0x20] sm:$0xff]  ;;  %v23_v14 = vld [vmem:[%s400_s1 + $0x28] sm:$0xff] }
   0x3   :  { %v37_v11 = vmul.f32 %v21_v7, %v21_v7  ;;  %v240_v12 = vpack.c.bf16 %v21_v7, %v20_v2  ;;  %v38_v16 = vmul.f32 %v22_v13, %v22_v13  ;;  %v144_v17 = vld [vmem:[%s401_s2] sm:$0xff] }
   0x4   :  { %v50_v10 = vadd.f32 %v35_v5, %v34_v4  ;;  %238 = vmatpush3.bf16.msra.mxu0 %v237_v6 }
   0x5   :  { %239 = vmatprep.subr.bf16.mxu0 %v292_v3 }
   0x6   :  { %v51_v15 = vadd.f32 %v50_v10, %v36_v8 }
   0x7   :  { %9 = vsyncpa [#allocation3], 0  ;;  %v39_v19 = vmul.f32 %v23_v14, %v23_v14  ;;  %v243_v20 = vpack.c.bf16 %v23_v14, %v22_v13  ;;  %v24_v21 = vld [vmem:[%s400_s1 + $0x30] sm:$0xff]  ;;  %v25_v22 = vld [vmem:[%s400_s1 + $0x38] sm:$0xff]  ;;  %v295_v23 = vmov 0   ;;  %v154_v7 = vlaneseq }
   0x8   :  { %v52_v18 = vadd.f32 %v51_v15, %v37_v11  ;;  %241 = vmatpush3.bf16.msra.mxu0 %v240_v12  ;;  %265 = vset.pattern.permute.xlu0 %v295_v23  ;;  %v40_v25 = vmul.f32 %v24_v21, %v24_v21  ;;  %v156_v26 = vld [vmem:[%s402_s3] sm:$0xff]  ;;  %v41_v28 = vmul.f32 %v25_v22, %v25_v22  ;;  %v27_v31 = vld [vmem:[%s400_s1 + $0x48] sm:$0xff]  ;;  %v28_v37 = vld [vmem:[%s400_s1 + $0x50] sm:$0xff] }
   0x9   :  { %242 = vmatprep.subr.bf16.mxu0 %v292_v3  ;;  %147 = vperm.xlu0 %265, %v144_v17   ;;  %v246_v29 = vpack.c.bf16 %v25_v22, %v24_v21  ;;  %v26_v30 = vld [vmem:[%s400_s1 + $0x40] sm:$0xff]  ;;  %v43_v35 = vmul.f32 %v27_v31, %v27_v31  ;;  %v29_v38 = vld [vmem:[%s400_s1 + $0x58] sm:$0xff]  ;;  %v44_v40 = vmul.f32 %v28_v37, %v28_v37  ;;  %v31_v45 = vld [vmem:[%s400_s1 + $0x68] sm:$0xff]  ;;  %v155_v11 = vand.u32 127, %v154_v7 }
   0xa   :  { %v53_v24 = vadd.f32 %v52_v18, %v38_v16  ;;  %v42_v33 = vmul.f32 %v26_v30, %v26_v30  ;;  %v249_v36 = vpack.c.bf16 %v27_v31, %v26_v30  ;;  %v45_v42 = vmul.f32 %v29_v38, %v29_v38  ;;  %v30_v44 = vld [vmem:[%s400_s1 + $0x60] sm:$0xff]  ;;  %v32_v51 = vld [vmem:[%s400_s1 + $0x70] sm:$0xff]  ;;  %v33_v52 = vld [vmem:[%s400_s1 + $0x78] sm:$0xff] }
   0xb   :  { %v252_v43 = vpack.c.bf16 %v29_v38, %v28_v37  ;;  %v46_v47 = vmul.f32 %v30_v44, %v30_v44  ;;  %v47_v49 = vmul.f32 %v31_v45, %v31_v45  ;;  %v255_v50 = vpack.c.bf16 %v31_v45, %v30_v44  ;;  %v73_v60 = vld [vmem:[%s399_s0] sm:$0xff]  ;;  %s296_s0 = smov [#allocation2]  }
   0xc   :  { %v54_v27 = vadd.f32 %v53_v24, %v39_v19  ;;  %244 = vmatpush3.bf16.msra.mxu0 %v243_v20  ;;  %v48_v54 = vmul.f32 %v32_v51, %v32_v51  ;;  %v49_v56 = vmul.f32 %v33_v52, %v33_v52  ;;  %v258_v57 = vpack.c.bf16 %v33_v52, %v32_v51  ;;  %s174_s1 = sshll.u32 %s296_s0, 4  ;;  %s175_s1 = int_to_ptr.vmem [resolvable:$true] %s174_s1 }
   0xd   :  { %245 = vmatprep.subr.bf16.mxu0 %v292_v3  ;;  %161 = vperm.xlu0 %265, %v156_v26   ;;  %s268_s25 = scalar_lea.vmem %s175_s1, 128  ;;  %p273_p1 = scmp.lt.s32.totalorder %s175_s1, %s175_s1 }
   0xe   :  { %v55_v32 = vadd.f32 %v54_v27, %v40_v25  ;;  %p269_p0 = scmp.ne.s32.totalorder %s175_s1, %s268_s25  ;;  %p274_p2 = scmp.lt.s32.totalorder %s268_s25, %s268_s25 }
  0x10   :  { %v56_v34 = vadd.f32 %v55_v32, %v41_v28  ;;  %247 = vmatpush3.bf16.msra.mxu0 %v246_v29  ;;  %p275_p3 = por %p274_p2, %p273_p1 }
  0x11   :  { %248 = vmatprep.subr.bf16.mxu0 %v292_v3 }
  0x12   :  { %v57_v39 = vadd.f32 %v56_v34, %v42_v33  ;;  %p276_p4 = pnand %p275_p3, %p269_p0 }
  0x14   :  { %v58_v41 = vadd.f32 %v57_v39, %v43_v35  ;;  %250 = vmatpush3.bf16.msra.mxu0 %v249_v36 }
  0x15   :  { %251 = vmatprep.subr.bf16.mxu0 %v292_v3 }
  0x16   :  { %v59_v46 = vadd.f32 %v58_v41, %v44_v40 }
  0x18   :  { %v60_v48 = vadd.f32 %v59_v46, %v45_v42  ;;  %253 = vmatpush3.bf16.msra.mxu0 %v252_v43 }
  0x19   :  { %254 = vmatprep.subr.bf16.mxu0 %v292_v3 }
  0x1a   :  { %v61_v53 = vadd.f32 %v60_v48, %v46_v47 }
  0x1c   :  { %v62_v55 = vadd.f32 %v61_v53, %v47_v49  ;;  %256 = vmatpush3.bf16.msra.mxu0 %v255_v50 }
  0x1d   :  { %257 = vmatprep.subr.bf16.mxu0 %v292_v3 }
  0x1e   :  { %v63_v58 = vadd.f32 %v62_v55, %v48_v54 }
  0x20   :  { %v64_v59 = vadd.f32 %v63_v58, %v49_v56  ;;  %259 = vmatpush3.bf16.msra.mxu0 %v258_v57 }
  0x22   :  { %v65_v61 = vrot.slane %v64_v59, 4 }
  0x23   :  { %234 = vmatmul.mubr.f32.vlgmr.msra.gmra.mrb[0].mxu0 %v73_v60 }
  0x24   :  { %v66_v62 = vadd.f32 %v65_v61, %v64_v59 }
  0x26   :  { %v67_v63 = vrot.slane %v66_v62, 2 }
  0x28   :  { %v68_v0 = vadd.f32 %v67_v63, %v66_v62 }
  0x2a   :  { %v69_v1 = vrot.slane %v68_v0, 1 }
  0x2c   :  { %v70_v2 = vadd.f32 %v69_v1, %v68_v0 }
  0x2e   :  { %v71_v4 = vmax.f32 %v70_v2, 1e-30 }
  0x30   :  { %266 = vrsqrt.f32 %v71_v4 }
  0x3a   :  { %v267_v6 = vpop.eup %266 }
  0x88   :  { %v148_v5 = vpop.permute.xlu0 %147 }
  0x8c   :  { %v162_v12 = vpop.permute.xlu0 %161 }
  0x8d   :  { %vm163_vm1 = vcmp.eq.s32.totalorder %v155_v11, %v162_v12 }
  0xf6   :  { %v140_v3 = vpop.f32.mrb[0].mxu0 }
  0xf7   :  { %v150_v8 = vmul.f32 %v148_v5, %v140_v3  ;;  %v235_v9 = vpop.f32.mrb[1].mxu0 }
  0xf9   :  { %v151_v10 = vmul.f32 %v267_v6, %v150_v8 }
  0xfb   :  { %v182_v13 = vclamps-f32 %v151_v10, 1.0 }
  0xfd   :  { %v183_v14 = vadd.f32 -0.35, %v182_v13 }
  0xff   :  { %v165_v15 = vsel %vm163_vm1, %v183_v14, %v182_v13 }
 0x100   :  { %v166_v16 = vmul.f32 30.0, %v165_v15 }
 0x102   :  { %167 = vst [vmem:[#allocation2] sm:$0xff] %v166_v16 }
 0x103   :  { %279 = shalt.err (!%p276_p4)
}
 0x104   :  { %s280_s28 = scalar_lea.hbm %s403_s4, 128 }
 0x105   :  { %p281_p5 = scmp.ne.s32.totalorder %s403_s4, %s280_s28  ;;  %p284_p6 = scmp.lt.u32.totalorder %s280_s28, %s403_s4 }
 0x107   :  { %p286_p7 = pnand %p284_p6, %p281_p5 }
 0x109   :  { %289 = shalt.err (!%p286_p7)
}
 0x10a   :  { %177 = dma.vmem_to_hbm [thread:$0]  %s175_s1, 128, %s403_s4, [#allocation3]  }
 0x10b   :  { %290 = dma.done.wait [#allocation3], 128  }
 0x10c   :  { %291 = vsyncadd [#allocation3], 4294967168 }
 0x10d   :  { %181 = vsyncpa [#allocation3], 1 }

</bundles_post_ra>
